<compile_context>
chip_gen: v6e
topology: v6e:2x2x1
jax: 0.10.0
libtpu: 0.0.40
codegen_flags: <defaults>
</compile_context>

<pallas_src>
from typing import Any, Dict

import jax
import jax.numpy as jnp
from jax.experimental import pallas as pl
from jax.experimental.pallas import tpu as pltpu


_LANE = 128
_SUBLANE = 8
# Below ~one vreg of data a pallas_call is pure launch / DMA-descriptor
# overhead; such tensors are passed through in plain JAX.
_MIN_PALLAS_ELEMS = _SUBLANE * _LANE
# Rows per grid step of the lane-dense (rows, 128) view.
# 2048 x 128 x 4 B = 1 MiB per block; x2 double-buffers x (in + out)
# = 4 MiB live VMEM -> fits every chip's scoped-VMEM default.
_MAX_BLOCK_ROWS = 2048


def _copy_kernel(x_ref, o_ref):
    # Pure copy: no elementwise work in the body, so the only consumers are
    # the load/store slots and the kernel rides the HBM roofline.
    o_ref[...] = x_ref[...]


@jax.jit
def _pallas_identity_impl(x: jax.Array) -> jax.Array:
    """Value-preserving pass-through of one tensor (Pallas path)."""
    n = x.size
    orig_shape = x.shape
    flat = x.reshape(-1)

    # Lane-dense 2D view: last dim = 128 lanes -> unmasked full-width stores.
    rows = pl.cdiv(n, _LANE)
    if rows <= _MAX_BLOCK_ROWS:
        # Full-dim block: exempt from the (8, 128) divisibility rule.
        block_rows = rows
    else:
        block_rows = _MAX_BLOCK_ROWS
    rows_padded = pl.cdiv(rows, block_rows) * block_rows
    n_padded = rows_padded * _LANE
    if n_padded != n:
        flat = jnp.pad(flat, (0, n_padded - n))
    x2d = flat.reshape(rows_padded, _LANE)

    out2d = pl.pallas_call(
        _copy_kernel,
        out_shape=jax.ShapeDtypeStruct((rows_padded, _LANE), x.dtype),
        grid=(rows_padded // block_rows,),
        in_specs=[pl.BlockSpec((block_rows, _LANE), lambda i: (i, 0))],
        out_specs=pl.BlockSpec((block_rows, _LANE), lambda i: (i, 0)),
        # Alias the (intermediate) 2D view into the output buffer: a pure
        # copy needs no second HBM allocation.
        input_output_aliases={0: 0},
        compiler_params=pltpu.CompilerParams(
            dimension_semantics=("parallel",)),
    )(x2d)

    out_flat = out2d.reshape(-1)
    if n_padded != n:
        out_flat = out_flat[:n]
    return out_flat.reshape(orig_shape)


def _pallas_identity(x: jax.Array) -> jax.Array:
    """Value-preserving pass-through of one tensor of the data dict."""
    if x.size < _MIN_PALLAS_ELEMS:
        # Tiny tensor (e.g. a (2, 4) label): plain JAX identity is free;
        # a kernel here would be 100% dispatch overhead.
        return x
    return _pallas_identity_impl(x)


class AbstractTransform:
    """JAX/Pallas port of rising.transforms.abstract.AbstractTransform.

    Base class: forward() is abstract.  __call__ reproduces the grad-context
    dispatch (a no-op flag in JAX, where autodiff is trace-time) and forwards
    keyword data to forward().
    """

    def __init__(self, grad: bool = False, **kwargs):
        self.grad = grad
        self._registered_samplers = []
        for key, item in kwargs.items():
            setattr(self, key, item)

    def register_sampler(self, name: str, sampler, *args, **kwargs):
        # Python-level property indirection; no tensor compute involved.
        self._registered_samplers.append(name)
        if hasattr(self, name):
            raise NameError("Name %s already exists" % name)
        if not isinstance(sampler, (tuple, list)):
            sampler = [sampler]
        samplers = [(_s if callable(_s) else (lambda _v=_s: _v)) for _s in sampler]

        def sample():
            result = tuple(_s(*args, **kwargs) for _s in samplers)
            return result[0] if len(result) == 1 else result

        setattr(self, name, sample)

    def __call__(self, **data) -> Dict[str, Any]:
        # TODO(synk): torch.enable_grad()/torch.no_grad() contexts have no
        # Pallas/JAX runtime equivalent (JAX grads are trace-time); the `grad`
        # flag is retained but is a no-op here.
        return self.forward(**data)

    def forward(self, **data) -> dict:
        raise NotImplementedError


class _IdentityPassthroughTransform(AbstractTransform):
    """Minimal concrete subclass: forwards every tensor of the data dict
    through the value-preserving pass-through (plain JAX for tiny tensors,
    lane-dense aliased Pallas copy otherwise)."""

    def forward(self, **data) -> dict:
        return {k: _pallas_identity(v) for k, v in data.items()}


if __name__ == "__main__":
    key = jax.random.PRNGKey(0)
    k1, k2 = jax.random.split(key)
    # NCHW image-like tensor and a label tensor, matching rising's typical
    # {"data": ..., "label": ...} dict convention.
    x = jax.random.normal(k1, (2, 4, 16, 16), dtype=jnp.float32)
    label = jax.random.normal(k2, (2, 4), dtype=jnp.float32)

    transform = _IdentityPassthroughTransform(grad=False, keys=("data", "label"))
    out = transform(data=x, label=label)  # "data" hits the Pallas copy kernel

    jax.block_until_ready(out)

    assert out["data"].shape == x.shape and out["data"].dtype == x.dtype
    assert out["label"].shape == label.shape and out["label"].dtype == label.dtype
    assert bool(jnp.all(out["data"] == x)) and bool(jnp.all(out["label"] == label))
    print("KERNEL_OK")
</pallas_src>

<mosaic_0001>
module attributes {stable_mosaic.version = 11 : i64} {
  func.func @_copy_kernel(%arg0: i32, %arg1: memref<16x128xf32, #tpu.memory_space<vmem>>, %arg2: memref<16x128xf32, #tpu.memory_space<vmem>>) attributes {dimension_semantics = [#tpu.dimension_semantics<parallel>], iteration_bounds = array<i64: 1>, scalar_prefetch = 0 : i64, scratch_operands = 0 : i64, tpu.core_type = #tpu.core_type<tc>, window_params = [{transform_indices = @transform_0, window_bounds = array<i64: 16, 128>}, {transform_indices = @transform_1, window_bounds = array<i64: 16, 128>}]} {
    %c0 = arith.constant 0 : index
    %c0_0 = arith.constant 0 : index
    %0 = vector.load %arg1[%c0, %c0_0] : memref<16x128xf32, #tpu.memory_space<vmem>>, vector<16x128xf32>
    %c0_1 = arith.constant 0 : index
    %c0_2 = arith.constant 0 : index
    %1 = vector.load %arg2[%c0_1, %c0_2] : memref<16x128xf32, #tpu.memory_space<vmem>>, vector<16x128xf32>
    tpu.vector_store %arg2[%c0_1, %c0_2], %0 {strides = array<i32>} : memref<16x128xf32, #tpu.memory_space<vmem>>, vector<16x128xf32>,
    return
  }
  func.func @transform_0(%arg0: i32) -> (i32, i32) {
    %c0_i32 = arith.constant 0 : i32
    %c0_i32_0 = arith.constant 0 : i32
    return %arg0, %c0_i32 : i32, i32
  }
  func.func @transform_1(%arg0: i32) -> (i32, i32) {
    %c0_i32 = arith.constant 0 : i32
    %c0_i32_0 = arith.constant 0 : i32
    return %arg0, %c0_i32 : i32, i32
  }
}

</mosaic_0001>

<bundles_post_ra>
// kernel: _pallas_identity_impl.1
= control target key start
LH: loop header
LB: loop body
LE: loop exit
PB: predicated region body
PF: predicated region fallthrough
CT: control target
= control target key end

     0   :  { %s38_s0 = inlined_call_operand.vmem [shape: f32[16,128], index: 0, kind: input, shape index: {}, may-alias: {0,1}]   ;;  %s39_s1 = inlined_call_operand.vmem [shape: f32[16,128], index: 1, kind: output, shape index: {}, may-alias: {0,1}]  }
   0x1   :  { %v8_v0 = vld [vmem:[%s38_s0] sm:$0xff]  ;;  %v9_v1 = vld [vmem:[%s38_s0 + $0x8] sm:$0xff] }
   0x2   :  { %10 = vst [vmem:[%s39_s1] sm:$0xff] %v8_v0  ;;  %11 = vst [vmem:[%s39_s1 + $0x8] sm:$0xff] %v9_v1 }

</bundles_post_ra>
